<compile_context>
chip_gen: v6e
topology: v6e:2x2x1
jax: 0.10.0
libtpu: 0.0.40
codegen_flags: <defaults>
</compile_context>

<pallas_src>
import jax
import jax.numpy as jnp
from jax.experimental import pallas as pl
from jax.experimental.pallas import tpu as pltpu


def fusion_layer_kernel(fusion_ref, h_ref, w1_ref, b1_ref, w2_ref, b2_ref, out_ref):
    nol = h_ref.shape[0]

    # 1) Fusion: weighted sum over the `nol` layer representations.
    #    Per-layer scalar weights come from SMEM (cheap scalar reads).
    hp = fusion_ref[0] * h_ref[0]
    for l in range(1, nol):
        hp = hp + fusion_ref[l] * h_ref[l]

    # 2) Hidden FC layer + ReLU:  hp @ W1 + b1
    h1 = jnp.dot(hp, w1_ref[...], preferred_element_type=jnp.float32) + b1_ref[...]
    h1 = jnp.maximum(h1, 0.0)

    # 3) Final FC layer: logits = h1 @ W2 + b2
    logits = jnp.dot(h1, w2_ref[...], preferred_element_type=jnp.float32) + b2_ref[...]

    # 4) Softmax over the class dimension (exact division -> rows sum to 1;
    #    the divide is nowhere near the bottleneck of this HBM-bound kernel).
    m = jnp.max(logits, axis=-1, keepdims=True)
    e = jnp.exp(logits - m)
    s = jnp.sum(e, axis=-1, keepdims=True)
    out_ref[...] = e / s


def _round_up(x, m):
    return ((x + m - 1) // m) * m


def _choose_tile_n(N, requested):
    # Sublane-aligned tile, <= requested. Cap it so the grid keeps >= ~4 steps
    # when N allows it: on v7x the "parallel" N axis is sharded across 2 TCs,
    # and multiple steps per core are needed for DMA/compute overlap. For large
    # N the requested (default 1024) tile size amortizes per-step overhead on
    # single-TC chips (v5e/v6e).
    min_steps = 4
    cap = max(8, _round_up(pl.cdiv(N, min_steps), 8))
    return max(8, min(_round_up(requested, 8), cap))


def fusion_layer(h, fusion, w1, b1, w2, b2, *, tile_n=1024):
    nol, N, d = h.shape
    C = w2.shape[1]

    tile_n = _choose_tile_n(N, tile_n)
    grid = (pl.cdiv(N, tile_n),)

    fusion_flat = fusion.reshape(nol).astype(jnp.float32)

    itemsize = 4  # f32 everywhere
    bytes_accessed = (
        (h.size + w1.size + b1.size + w2.size + b2.size + nol) * itemsize
        + N * C * itemsize
    )
    cost = pl.CostEstimate(
        flops=2 * N * d * (d + C) + 2 * nol * N * d,
        transcendentals=N * C,
        bytes_accessed=bytes_accessed,
    )

    out = pl.pallas_call(
        fusion_layer_kernel,
        out_shape=jax.ShapeDtypeStruct((N, C), jnp.float32),
        grid=grid,
        in_specs=[
            pl.BlockSpec(memory_space=pltpu.MemorySpace.SMEM),    # fusion scalars
            pl.BlockSpec((nol, tile_n, d), lambda i: (0, i, 0)),  # tiled over N
            pl.BlockSpec((d, d), lambda i: (0, 0)),               # VMEM-resident
            pl.BlockSpec((1, d), lambda i: (0, 0)),
            pl.BlockSpec((d, C), lambda i: (0, 0)),
            pl.BlockSpec((1, C), lambda i: (0, 0)),
        ],
        out_specs=pl.BlockSpec((tile_n, C), lambda i: (i, 0)),
        compiler_params=pltpu.CompilerParams(
            dimension_semantics=("parallel",),
            # Per-step footprint is tiny (<1.5 MiB double-buffered at tile_n=1024,
            # d=32); 32 MiB is safe on v5e/v6e/v7x and leaves plenty of headroom.
            vmem_limit_bytes=32 * 1024 * 1024,
        ),
        cost_estimate=cost,
    )(fusion_flat, h, w1, b1, w2, b2)

    return out


def xavier_normal(key, fan_in, fan_out, gain):
    # matches nn.init.xavier_normal_ (std = gain * sqrt(2 / (fan_in + fan_out)))
    std = gain * jnp.sqrt(2.0 / (fan_in + fan_out))
    return std * jax.random.normal(key, (fan_in, fan_out), dtype=jnp.float32)


def reference_forward(h, fusion, w1, b1, w2, b2):
    hp = jnp.sum(h * fusion, axis=0)
    h1 = jnp.maximum(hp @ w1 + b1, 0.0)
    logits = h1 @ w2 + b2
    return jax.nn.softmax(logits, axis=1)


if __name__ == "__main__":
    # Small, module-consistent shapes. N is NOT a multiple of the tile size the
    # heuristic picks (16), exercising the unpadded partial-edge-block path.
    nol = 3          # number of layers being fused
    N = 44           # batch / number of nodes
    d = 32           # in_dim
    C = 16           # num_classes

    key = jax.random.PRNGKey(0)
    k_h, k_w1, k_b1, k_w2, k_b2 = jax.random.split(key, 5)

    gain = jnp.sqrt(2.0)  # nn.init.calculate_gain('relu')

    h = jax.random.normal(k_h, (nol, N, d), dtype=jnp.float32)
    fusion = jnp.full((nol, 1, 1), 1.0 / nol, dtype=jnp.float32)  # constant init 1/nol
    w1 = xavier_normal(k_w1, d, d, gain)                          # hidden Linear(d, d)
    b1 = 0.01 * jax.random.normal(k_b1, (1, d), dtype=jnp.float32)
    w2 = xavier_normal(k_w2, d, C, gain)                          # final Linear(d, C)
    b2 = 0.01 * jax.random.normal(k_b2, (1, C), dtype=jnp.float32)

    out = fusion_layer(h, fusion, w1, b1, w2, b2)
    out = jax.block_until_ready(out)

    ref = reference_forward(h, fusion, w1, b1, w2, b2)
    assert out.shape == (N, C)
    assert jnp.allclose(out, ref, atol=1e-5), "mismatch vs pure-JAX reference"

    print("KERNEL_OK")
</pallas_src>

<mosaic_0001>
module attributes {stable_mosaic.version = 11 : i64} {
  func.func @fusion_layer_kernel(%arg0: i32, %arg1: memref<3xf32, #tpu.memory_space<smem>>, %arg2: memref<3x16x32xf32, #tpu.memory_space<vmem>>, %arg3: memref<32x32xf32, #tpu.memory_space<vmem>>, %arg4: memref<1x32xf32, #tpu.memory_space<vmem>>, %arg5: memref<32x16xf32, #tpu.memory_space<vmem>>, %arg6: memref<1x16xf32, #tpu.memory_space<vmem>>, %arg7: memref<16x16xf32, #tpu.memory_space<vmem>>) attributes {dimension_semantics = [#tpu.dimension_semantics<parallel>], iteration_bounds = array<i64: 3>, scalar_prefetch = 0 : i64, scratch_operands = 0 : i64, tpu.core_type = #tpu.core_type<tc>, window_params = [{transform_indices = @transform_0, window_bounds = array<i64: 3>}, {transform_indices = @transform_1, window_bounds = array<i64: 3, 16, 32>}, {pipeline_mode = #tpu.pipeline_mode<synchronous>, transform_indices = @transform_2, window_bounds = array<i64: 32, 32>}, {pipeline_mode = #tpu.pipeline_mode<synchronous>, transform_indices = @transform_3, window_bounds = array<i64: 1, 32>}, {pipeline_mode = #tpu.pipeline_mode<synchronous>, transform_indices = @transform_4, window_bounds = array<i64: 32, 16>}, {pipeline_mode = #tpu.pipeline_mode<synchronous>, transform_indices = @transform_5, window_bounds = array<i64: 1, 16>}, {transform_indices = @transform_6, window_bounds = array<i64: 16, 16>}]} {
    %c0 = arith.constant 0 : index
    %0 = memref.load %arg1[%c0] : memref<3xf32, #tpu.memory_space<smem>>
    %c0_0 = arith.constant 0 : index
    %c0_1 = arith.constant 0 : index
    %c0_2 = arith.constant 0 : index
    %1 = vector.load %arg2[%c0_0, %c0_1, %c0_2] : memref<3x16x32xf32, #tpu.memory_space<vmem>>, vector<1x16x32xf32>
    %2 = vector.shape_cast %1 : vector<1x16x32xf32> to vector<16x32xf32>
    %3 = vector.broadcast %0 : f32 to vector<16x32xf32>
    %4 = arith.mulf %3, %2 : vector<16x32xf32>
    %c1 = arith.constant 1 : index
    %5 = memref.load %arg1[%c1] : memref<3xf32, #tpu.memory_space<smem>>
    %c1_3 = arith.constant 1 : index
    %c0_4 = arith.constant 0 : index
    %c0_5 = arith.constant 0 : index
    %6 = vector.load %arg2[%c1_3, %c0_4, %c0_5] : memref<3x16x32xf32, #tpu.memory_space<vmem>>, vector<1x16x32xf32>
    %7 = vector.shape_cast %6 : vector<1x16x32xf32> to vector<16x32xf32>
    %8 = vector.broadcast %5 : f32 to vector<16x32xf32>
    %9 = arith.mulf %8, %7 : vector<16x32xf32>
    %10 = arith.addf %4, %9 : vector<16x32xf32>
    %c2 = arith.constant 2 : index
    %11 = memref.load %arg1[%c2] : memref<3xf32, #tpu.memory_space<smem>>
    %c2_6 = arith.constant 2 : index
    %c0_7 = arith.constant 0 : index
    %c0_8 = arith.constant 0 : index
    %12 = vector.load %arg2[%c2_6, %c0_7, %c0_8] : memref<3x16x32xf32, #tpu.memory_space<vmem>>, vector<1x16x32xf32>
    %13 = vector.shape_cast %12 : vector<1x16x32xf32> to vector<16x32xf32>
    %14 = vector.broadcast %11 : f32 to vector<16x32xf32>
    %15 = arith.mulf %14, %13 : vector<16x32xf32>
    %16 = arith.addf %10, %15 : vector<16x32xf32>
    %c0_9 = arith.constant 0 : index
    %c0_10 = arith.constant 0 : index
    %17 = vector.load %arg3[%c0_9, %c0_10] : memref<32x32xf32, #tpu.memory_space<vmem>>, vector<32x32xf32>
    %cst = arith.constant dense<0.000000e+00> : vector<16x32xf32>
    %18 = tpu.matmul %16, %17, %cst {dimension_numbers = #tpu.dot_dimension_numbers<[1], [0], [0], [1], [0, 0, 1, 1], [], []>} : vector<16x32xf32>, vector<32x32xf32>, vector<16x32xf32> -> vector<16x32xf32>
    %c0_11 = arith.constant 0 : index
    %c0_12 = arith.constant 0 : index
    %19 = vector.load %arg4[%c0_11, %c0_12] : memref<1x32xf32, #tpu.memory_space<vmem>>, vector<1x32xf32>
    %20 = vector.broadcast %19 : vector<1x32xf32> to vector<16x32xf32>
    %21 = arith.addf %18, %20 : vector<16x32xf32>
    %cst_13 = arith.constant 0.000000e+00 : f32
    %22 = vector.broadcast %cst_13 : f32 to vector<16x32xf32>
    %23 = arith.maximumf %21, %22 : vector<16x32xf32>
    %c0_14 = arith.constant 0 : index
    %c0_15 = arith.constant 0 : index
    %24 = vector.load %arg5[%c0_14, %c0_15] : memref<32x16xf32, #tpu.memory_space<vmem>>, vector<32x16xf32>
    %cst_16 = arith.constant dense<0.000000e+00> : vector<16x16xf32>
    %25 = tpu.matmul %23, %24, %cst_16 {dimension_numbers = #tpu.dot_dimension_numbers<[1], [0], [0], [1], [0, 0, 1, 1], [], []>} : vector<16x32xf32>, vector<32x16xf32>, vector<16x16xf32> -> vector<16x16xf32>
    %c0_17 = arith.constant 0 : index
    %c0_18 = arith.constant 0 : index
    %26 = vector.load %arg6[%c0_17, %c0_18] : memref<1x16xf32, #tpu.memory_space<vmem>>, vector<1x16xf32>
    %27 = vector.broadcast %26 : vector<1x16xf32> to vector<16x16xf32>
    %28 = arith.addf %25, %27 : vector<16x16xf32>
    %cst_19 = arith.constant dense<0xFF800000> : vector<16xf32>
    %29 = vector.multi_reduction <maximumf>, %28, %cst_19 [1] : vector<16x16xf32> to vector<16xf32>
    %30 = vector.shape_cast %29 : vector<16xf32> to vector<16x1xf32>
    %31 = vector.broadcast %30 : vector<16x1xf32> to vector<16x16xf32>
    %32 = arith.subf %28, %31 : vector<16x16xf32>
    %33 = math.exp %32 : vector<16x16xf32>
    %cst_20 = arith.constant dense<0.000000e+00> : vector<16xf32>
    %34 = vector.multi_reduction <add>, %33, %cst_20 [1] : vector<16x16xf32> to vector<16xf32>
    %35 = vector.shape_cast %34 : vector<16xf32> to vector<16x1xf32>
    %36 = vector.broadcast %35 : vector<16x1xf32> to vector<16x16xf32>
    %37 = arith.divf %33, %36 : vector<16x16xf32>
    %c0_21 = arith.constant 0 : index
    %c0_22 = arith.constant 0 : index
    %38 = vector.load %arg7[%c0_21, %c0_22] : memref<16x16xf32, #tpu.memory_space<vmem>>, vector<16x16xf32>
    tpu.vector_store %arg7[%c0_21, %c0_22], %37 {strides = array<i32>} : memref<16x16xf32, #tpu.memory_space<vmem>>, vector<16x16xf32>,
    return
  }
  func.func @transform_0(%arg0: i32) -> i32 {
    %c0_i32 = arith.constant 0 : i32
    %c0_i32_0 = arith.constant 0 : i32
    return %c0_i32 : i32
  }
  func.func @transform_1(%arg0: i32) -> (i32, i32, i32) {
    %c0_i32 = arith.constant 0 : i32
    %c0_i32_0 = arith.constant 0 : i32
    %c0_i32_1 = arith.constant 0 : i32
    return %c0_i32, %arg0, %c0_i32_0 : i32, i32, i32
  }
  func.func @transform_2(%arg0: i32) -> (i32, i32) {
    %c0_i32 = arith.constant 0 : i32
    %c0_i32_0 = arith.constant 0 : i32
    %c0_i32_1 = arith.constant 0 : i32
    return %c0_i32, %c0_i32_0 : i32, i32
  }
  func.func @transform_3(%arg0: i32) -> (i32, i32) {
    %c0_i32 = arith.constant 0 : i32
    %c0_i32_0 = arith.constant 0 : i32
    %c0_i32_1 = arith.constant 0 : i32
    return %c0_i32, %c0_i32_0 : i32, i32
  }
  func.func @transform_4(%arg0: i32) -> (i32, i32) {
    %c0_i32 = arith.constant 0 : i32
    %c0_i32_0 = arith.constant 0 : i32
    %c0_i32_1 = arith.constant 0 : i32
    return %c0_i32, %c0_i32_0 : i32, i32
  }
  func.func @transform_5(%arg0: i32) -> (i32, i32) {
    %c0_i32 = arith.constant 0 : i32
    %c0_i32_0 = arith.constant 0 : i32
    %c0_i32_1 = arith.constant 0 : i32
    return %c0_i32, %c0_i32_0 : i32, i32
  }
  func.func @transform_6(%arg0: i32) -> (i32, i32) {
    %c0_i32 = arith.constant 0 : i32
    %c0_i32_0 = arith.constant 0 : i32
    return %arg0, %c0_i32 : i32, i32
  }
}

</mosaic_0001>

<bundles_post_ra>
// kernel: tpu_custom_call.1
= control target key start
LH: loop header
LB: loop body
LE: loop exit
PB: predicated region body
PF: predicated region fallthrough
CT: control target
= control target key end

     0   :  { %11 = vsyncpa [#allocation3], 0  ;;  %s818_s21 = smov 0   ;;  %s820_s22 = smov 0   ;;  %s939_s0 = inlined_call_operand.vmem [shape: f32[3], index: 0, kind: input, shape index: {}]   ;;  %s940_s1 = inlined_call_operand.vmem [shape: f32[3,44,32], index: 1, kind: input, shape index: {}]   ;;  %s941_s2 = inlined_call_operand.vmem [shape: f32[32,32], index: 2, kind: input, shape index: {}]   ;;  %s942_s3 = inlined_call_operand.vmem [shape: f32[1,32], index: 3, kind: input, shape index: {}]   ;;  %s943_s4 = inlined_call_operand.vmem [shape: f32[32,16], index: 4, kind: input, shape index: {}]   ;;  %s944_s5 = inlined_call_operand.vmem [shape: f32[1,16], index: 5, kind: input, shape index: {}]   ;;  %s945_s6 = inlined_call_operand.vmem [shape: f32[44,16], index: 6, kind: output, shape index: {}]  }
   0x1   :  { %s822_s23 = smov 0  }
   0x2 LB: > { %s634_s24 = sadd.s32 4294967295, %s780_s23   ;;  %s835_s25 = sadd.s32 1, %s780_s23   ;;  %s780_s23 = sphi %s822_s23, %s951_s23   ;;  %s776_s22 = sphi %s820_s22, %s950_s22   ;;  %s772_s21 = sphi %s818_s21, %s949_s21  }
   0x3   : > { %s42_s26 = ssub.s32 %s780_s23, %s835_s25  ;;  %s45_s27 = sadd.s32 1, %s776_s22 }
   0x4   : > { %p43_p0 = scmp.eq.s32.totalorder %s42_s26, 0  ;;  %p52_p1 = scmp.ne.s32.totalorder %s776_s22, %s772_s21 }
   0x5   : > { %p53_p2 = scmp.eq.s32.totalorder %s780_s23, 0  ;;  %p636_p3 = scmp.ge.s32.totalorder %s780_s23, 1 }
   0x6   : > { %s845_s28 = scalar_select %p43_p0, %s776_s22, %s45_s27  }
   0x7   : > { %p847_p4 = por %p53_p2, %p52_p1  ;;  %p179_p5 = scmp.lt.s32.totalorder %s780_s23, 4 }
   0x8   : > { %p854_p6 = scmp.eq.s32.totalorder %s634_s24, 0  ;;  %s192_s10 = sshll.u32 %s939_s0, 4  ;;  %s193_s10 = int_to_ptr.vmem [resolvable:$true] %s192_s10 }
   0x9   : > { %p858_p7 = pnand %p636_p3, %p179_p5  ;;  %s739_s11 = scalar_lea.vmem %s193_s10, 16 }
   0xa   : > { %p740_p10 = scmp.ne.s32.totalorder %s193_s10, %s739_s11  ;;  %p747_p0 = scmp.lt.s32.totalorder %s193_s10, %s193_s10 }
   0xb   : > { %p700_p8 = pneg %p858_p7  ;;  %p748_p1 = scmp.lt.s32.totalorder %s739_s11, %s739_s11 }
   0xd   : > { %p701_p9 = pnand %p854_p6, %p700_p8  ;;  %p749_p2 = por %p748_p1, %p747_p0 }
   0xf   : > { %p741_p11 = pneg %p701_p9 }
  0x11   : > { %p742_p12 = pnand %p741_p11, %p740_p10 }
  0x13   : > { %p743_p13 = pneg %p742_p12 }
  0x15   : > { %p750_p3 = pnand %p749_p2, %p743_p13 }
  0x17   : > { %753 = shalt.err (!%p750_p3)
}
  0x18   : > { %s782_s12 = smov [#allocation2]   ;;  %p638_p5 = scmp.ge.s32.totalorder %s780_s23, 3 }
  0x19   : > { %703 = dma.vmem_to_smem (!%p701_p9), %s193_s10, 16, %s782_s12, [#allocation3]  }
  0x1a   : > { %211 = sbr.rel (%p638_p5) target bundleno = 39 (0x27), region = 36 }
  0x1f   : > { %214 = sbr.rel (!%p847_p4) target bundleno = 39 (0x27), region = 40  ;;  %s216_s13 = sand.u32 (%p847_p4), 1, %s776_s22  }
  0x20   : > { %s659_s14 = sshll.u32 (%p847_p4), %s780_s23, 4  ;;  %s694_s15 = smul.u32 (%p847_p4), 48, %s216_s13 }
  0x21   : > { %s221_s18 = scalar_lea.vmem (%p847_p4), %s940_s1, %s659_s14 }
  0x22   : > { %v260_v0 = vld [vmem:[%s221_s18] sm:$0xff] (%p847_p4)  ;;  %v262_v1 = vld [vmem:[%s221_s18 + $0x8] sm:$0xff] (%p847_p4)  ;;  %v264_v2 = vld [vmem:[%s221_s18 + $0x30] sm:$0xff] (%p847_p4)  ;;  %s218_s19 = scalar_lea.vmem (%p847_p4), [#allocation4], %s694_s15 }
  0x23   : > { %v266_v3 = vld [vmem:[%s221_s18 + $0x38] sm:$0xff] (%p847_p4)  ;;  %v268_v4 = vld [vmem:[%s221_s18 + $0x60] sm:$0xff] (%p847_p4)  ;;  %v270_v5 = vld [vmem:[%s221_s18 + $0x68] sm:$0xff] (%p847_p4)  ;;  %261 = vst [vmem:[%s218_s19] sm:$0xff] (%p847_p4), %v260_v0 }
  0x24   : > { %263 = vst [vmem:[%s218_s19 + $0x8] sm:$0xff] %v262_v1  ;;  %265 = vst [vmem:[%s218_s19 + $0x10] sm:$0xff] %v264_v2 }
  0x25   : > { %267 = vst [vmem:[%s218_s19 + $0x18] sm:$0xff] %v266_v3  ;;  %269 = vst [vmem:[%s218_s19 + $0x20] sm:$0xff] %v268_v4 }
  0x26   : > { %271 = vst [vmem:[%s218_s19 + $0x28] sm:$0xff] %v270_v5 }
  0x27 PF: > { %280 = sbr.rel (%p858_p7) target bundleno = 779 (0x30b), region = 78 }
  0x2c   : > { %767 = dma.done.wait (%p854_p6), [#allocation3], 16  }
  0x2d   : > { %769 = vsyncadd (%p854_p6), [#allocation3], 4294967280  ;;  %s287_s20 = sand.u32 1, %s772_s21  }
  0x2e   : > { %s695_s26 = smul.u32 48, %s287_s20 }
  0x30   : > { %s289_s27 = scalar_lea.vmem [#allocation4], %s695_s26 }
  0x31   : > { %293 = sfence }
  0x32   : > { %v351_v6 = vld [vmem:[%s941_s2 + $0x18] sm:$0xff]  ;;  %v350_v7 = vld [vmem:[%s941_s2 + $0x10] sm:$0xff]  ;;  %s324_s7 = sld [smem:[#allocation2]]  ;;  %v349_v8 = vld [vmem:[%s941_s2 + $0x8] sm:$0xff]  ;;  %vm359_vm0 = vcmask 261120   ;;  %vm535_vm1 = vcmask 130048  }
  0x33   : > { %672 = vmatprep.subr.mxu0 %v351_v6  ;;  %s645_s11 = sld [smem:[#allocation2 + $0x1]]  ;;  %v348_v9 = vld [vmem:[%s941_s2] sm:$0xff]  ;;  %v326_v11 = vld [vmem:[%s289_s27 + $0x8] sm:$0xff]  ;;  %v647_v13 = vld [vmem:[%s289_s27 + $0x18] sm:$0xff] }
  0x34   : > { %673 = vmatpush3.msra.mxu0 %v351_v6  ;;  %s648_s21 = sld [smem:[#allocation2 + $0x2]]  ;;  %v325_v10 = vld [vmem:[%s289_s27] sm:$0xff]  ;;  %v646_v12 = vld [vmem:[%s289_s27 + $0x10] sm:$0xff]  ;;  %v650_v16 = vld [vmem:[%s289_s27 + $0x28] sm:$0xff] }
  0x35   : > { %674 = vmatprep.subr.mxu0 %v350_v7  ;;  %v649_v15 = vld [vmem:[%s289_s27 + $0x20] sm:$0xff]  ;;  %v446_v29 = vld [vmem:[%s943_s4 + $0x18] sm:$0xff]  ;;  %v444_v31 = vld [vmem:[%s943_s4 + $0x8] sm:$0xff] }
  0x36   : > { %675 = vmatpush3.msra.mxu0 %v350_v7  ;;  %683 = vmatprep.subr.mxu1 %v446_v29  ;;  %v445_v30 = vld [vmem:[%s943_s4 + $0x10] sm:$0xff]  ;;  %v443_v32 = vld [vmem:[%s943_s4] sm:$0xff] }
  0x37   : > { %676 = vmatprep.subr.mxu0 %v349_v8  ;;  %684 = vmatpush3.msra.mxu1 %v446_v29  ;;  %v651_v33 = vld [vmem:[%s942_s3] ss:$0 sm:$0xff] }
  0x38   : > { %677 = vmatpush3.msra.mxu0 %v349_v8  ;;  %v327_v14 = vstv %s324_s7  ;;  %685 = vmatprep.subr.mxu1 %v445_v30  ;;  %v654_v41 = vld [vmem:[%s944_s5] ss:$0 sm:$0xff]  ;;  %s643_s7 = sshll.u32 %s634_s24, 1 }
  0x39   : > { %678 = vmatprep.subr.mxu0 %v348_v9  ;;  %v328_v17 = vmul.f32 %v327_v14, %v325_v10  ;;  %v329_v18 = vmul.f32 %v327_v14, %v326_v11  ;;  %v334_v19 = vstv %s645_s11  ;;  %686 = vmatpush3.msra.mxu1 %v445_v30  ;;  %p319_p4 = scmp.lt.s32.totalorder %s643_s7, 5 }
  0x3a   : > { %679 = vmatpush3.msra.mxu0 %v348_v9  ;;  %v335_v20 = vmul.f32 %v646_v12, %v334_v19  ;;  %v336_v21 = vmul.f32 %v647_v13, %v334_v19  ;;  %v343_v22 = vstv %s648_s21  ;;  %687 = vmatprep.subr.mxu1 %v444_v31 }
  0x3b   : > { %v344_v23 = vmul.f32 %v649_v15, %v343_v22  ;;  %v345_v24 = vmul.f32 %v650_v16, %v343_v22  ;;  %688 = vmatpush3.msra.mxu1 %v444_v31  ;;  %s953_s7 = smov (!%p319_p4, %s643_s7), 5 }
  0x3c   : > { %v337_v25 = vadd.f32 %v335_v20, %v328_v17  ;;  %v338_v26 = vadd.f32 %v336_v21, %v329_v18  ;;  %689 = vmatprep.subr.mxu1 %v443_v32  ;;  %s644_s11 = sshll.u32 %s953_s7, 3 }
  0x3d   : > { %690 = vmatpush3.msra.mxu1 %v443_v32  ;;  %s322_s21 = scalar_lea.vmem %s945_s6, %s644_s11 }
  0x3e   : > { %v346_v27 = vadd.f32 %v344_v23, %v337_v25  ;;  %v347_v28 = vadd.f32 %v345_v24, %v338_v26 }
  0x40   : > { %680 = vmatprep.mubr.msk.f32.mxu0 %vm359_vm0, %v346_v27 }
  0x41   : > { %681 = vmatmul.mubr.msk.f32.vlgmr.msra.gmra.mxu0 %vm359_vm0, %v347_v28 }
 0x101   : > { %v682_v34 = vpop.f32.mrf.mxu0 }
 0x102   : > { %v438_v35 = vadd.f32 %v682_v34, %v651_v33 }
 0x103   : > { %v432_v36 = vpop.f32.mrf.mxu0 }
 0x104   : > { %v433_v37 = vadd.f32 %v651_v33, %v432_v36  ;;  %v442_v39 = vmax.f32 %v438_v35, 0.0 }
 0x106   : > { %v441_v38 = vmax.f32 %v433_v37, 0.0 }
 0x108   : > { %691 = vmatprep.mubr.msk.f32.mxu1 %vm359_vm0, %v441_v38 }
 0x109   : > { %692 = vmatmul.mubr.msk.f32.vlgmr.msra.gmra.mxu1 %vm359_vm0, %v442_v39 }
 0x1c9   : > { %v693_v40 = vpop.f32.mrf.mxu1 }
 0x1ca   : > { %v532_v44 = vadd.f32 %v693_v40, %v654_v41 }
 0x1cb   : > { %v526_v42 = vpop.f32.mrf.mxu1 }
 0x1cc   : > { %v527_v43 = vadd.f32 %v654_v41, %v526_v42  ;;  %v539_v46 = vsel %vm535_vm1, %v532_v44, -inf }
 0x1ce   : > { %v536_v45 = vsel %vm535_vm1, %v527_v43, -inf }
 0x1cf   : > { %537 = vmax.xlane.f32.xlu0 %v536_v45 }
 0x1d3   : > { %540 = vmax.xlane.f32.xlu0 %v539_v46 }
 0x258   : > { %v538_v47 = vpop.xlane.xlu0 %537 }
 0x259   : > { %v542_v48 = vsub.f32 %v527_v43, %v538_v47 }
 0x25b   : > { %v544_v49 = vmul.f32 1.442695, %v542_v48 }
 0x25c   : > { %v541_v50 = vpop.xlane.xlu0 %540 }
 0x25d   : > { %731 = vpow2.f32 %v544_v49  ;;  %v543_v51 = vsub.f32 %v532_v44, %v541_v50 }
 0x25f   : > { %v546_v52 = vmul.f32 1.442695, %v543_v51 }
 0x261   : > { %733 = vpow2.f32 %v546_v52 }
 0x26a   : > { %v732_v53 = vpop.eup %731 }
 0x26b   : > { %v548_v54 = vsel %vm535_vm1, %v732_v53, 0.0 }
 0x26c   : > { %549 = vadd.xlane.f32.xlu1 %v548_v54 }
 0x26e   : > { %v734_v55 = vpop.eup %733 }
 0x26f   : > { %v551_v56 = vsel %vm535_vm1, %v734_v55, 0.0 }
 0x270   : > { %552 = vadd.xlane.f32.xlu1 %v551_v56 }
 0x2f5   : > { %v550_v57 = vpop.xlane.xlu1 %549 }
 0x2f6   : > { %735 = vrcp.f32 %v550_v57 }
 0x2f9   : > { %v553_v58 = vpop.xlane.xlu1 %552 }
 0x2fa   : > { %737 = vrcp.f32 %v553_v58 }
 0x303   : > { %v736_v59 = vpop.eup %735 }
 0x304   : > { %v555_v60 = vmul.f32 %v736_v59, %v732_v53 }
 0x306   : > { %558 = vst.msk [vmem:[%s322_s21] sm:$0xff] %vm535_vm1, %v555_v60 }
 0x307   : > { %v738_v61 = vpop.eup %737 }
 0x308   : > { %v557_v62 = vmul.f32 %v738_v61, %v734_v55 }
 0x30a   : > { %559 = vst.msk [vmem:[%s322_s21 + $0x8] sm:$0xff] %vm535_vm1, %v557_v62 }
 0x30b PF: > { %p14_p6 = scmp.ge.s32.totalorder %s835_s25, 5   ;;  %s949_s21 = smov %s776_s22 }
 0x30c   : > { %s950_s22 = smov %s845_s28  ;;  %s951_s23 = smov %s835_s25 }
 0x30d   :  { %16 = sbr.rel (!%p14_p6) target bundleno = 2 (0x2), region = 124 }
 0x312   :  { %582 = vsyncpa [#allocation3], 1 }
 0x313   :  { %584 = vsyncpa [#allocation3 + $0x1], 1 }

</bundles_post_ra>
